<compile_context>
chip_gen: v6e
topology: v6e:2x2x1
jax: 0.10.0
libtpu: 0.0.40
codegen_flags: <defaults>
</compile_context>

<pallas_src>
import jax
import jax.numpy as jnp
from jax.experimental import pallas as pl
from jax.experimental.pallas import tpu as pltpu

BN_EPS = 1e-5  # nn.BatchNorm1d default eps (momentum only affects running stats)


def encoder_cnn_kernel(x_ref, w_ref, gamma_ref, beta_ref, out_ref, feat_scr):
    # x_ref:     [TB, HW, C] batch tile of the feature map (channels-last)
    # w_ref:     [C, Tp] bf16 linear weight (pre-transposed, padded), resident
    # gamma_ref: [1, Tp]  BN scale (padded)
    # beta_ref:  [1, Tp]  BN shift (padded)
    # out_ref:   [B, Tp]  full output block (constant index -> resident)
    # feat_scr:  [B, C] f32 persistent pooled-feature stash (full batch)
    i = pl.program_id(0)
    tb = x_ref.shape[0]

    # resnet AdaptiveAvgPool2d((1,1)) on this batch tile: spatial sum with f32
    # accumulation (no full-tile f32 temporary); the 1/HW scale is applied
    # once in the epilogue.  C stays on the lane axis throughout.
    feat = jnp.sum(x_ref[...], axis=1, dtype=jnp.float32)           # [TB, C]

    row = pl.multiple_of(i * tb, tb)
    feat_scr[pl.ds(row, tb), :] = feat

    # self.linear + self.bn (training mode -> biased batch statistics) once
    # the whole batch has been pooled.
    @pl.when(i == pl.num_programs(0) - 1)
    def _():
        inv_hw = 1.0 / x_ref.shape[1]
        feat_all = (feat_scr[...] * inv_hw).astype(jnp.bfloat16)     # [B, C]
        # Single M=B GEMM on the MXU (bf16 x bf16 -> f32 accumulation).
        y = jnp.dot(feat_all, w_ref[...],
                    preferred_element_type=jnp.float32)              # [B, Tp]
        # (linear bias omitted: a per-feature constant is removed exactly by
        #  the batch-mean subtraction below)
        mu = jnp.mean(y, axis=0, keepdims=True)                      # [1, Tp]
        var = jnp.mean((y - mu) * (y - mu), axis=0, keepdims=True)   # [1, Tp]
        y_hat = (y - mu) * jax.lax.rsqrt(var + BN_EPS)
        out_ref[...] = (y_hat * gamma_ref[...] + beta_ref[...]).astype(out_ref.dtype)


def _pick_batch_tile(batch, dtype):
    # Channels-last streamed tiles are compact ([TB, HW(<=56 padded sublanes),
    # C=2048 lanes]); TB=32 bf16 at real resnet152 shapes is ~7 MiB per
    # buffer, comfortably inside every generation's scoped VMEM even with
    # double-buffering (v7x scoped 32 MiB of 64 MiB physical is the tightest).
    cap = 32 if dtype == jnp.bfloat16 else 16
    for cand in (32, 16, 8, 4, 2, 1):
        if cand <= cap and batch % cand == 0:
            return cand
    return 1


def encoder_cnn_forward(features, w, b, gamma, beta, *,
                        channels_last=True, batch_tile=None):
    """features: [B, H, W, C] (channels_last=True, preferred; the native TPU
       conv layout) or [B, C, H, W] (PyTorch NCHW; transposed here).
       w: [T, C] (PyTorch nn.Linear layout); b, gamma, beta: [T]."""
    # Training-mode BatchNorm1d makes the linear bias a forward no-op: it is a
    # per-feature constant, cancelled exactly by the batch-mean subtraction.
    del b

    if not channels_last:
        # TODO(synk): extra HBM round trip; feed NHWC (what a TPU resnet trunk
        # emits natively) to avoid it.
        features = jnp.transpose(features, (0, 2, 3, 1))
    B, H, W, C = features.shape
    HW = H * W
    x = features.reshape(B, HW, C)        # contiguous (free) reshape of NHWC

    # Pad target_size to a lane-dense multiple of 128 (unmasked output stores,
    # sane MXU N); padded columns are all-zero and sliced off below.
    T = w.shape[0]
    Tp = ((T + 127) // 128) * 128
    if Tp != T:
        w = jnp.pad(w, ((0, Tp - T), (0, 0)))
        gamma = jnp.pad(gamma, (0, Tp - T))
        beta = jnp.pad(beta, (0, Tp - T))

    w_t = jnp.transpose(w, (1, 0)).astype(jnp.bfloat16)   # [C, Tp], resident
    g2 = gamma.reshape(1, Tp).astype(jnp.float32)
    be2 = beta.reshape(1, Tp).astype(jnp.float32)

    if batch_tile is None:
        batch_tile = _pick_batch_tile(B, x.dtype)
    TB = batch_tile
    assert B % TB == 0, (B, TB)
    num_tiles = B // TB

    out = pl.pallas_call(
        encoder_cnn_kernel,
        out_shape=jax.ShapeDtypeStruct((B, Tp), jnp.float32),
        grid_spec=pltpu.PrefetchScalarGridSpec(
            num_scalar_prefetch=0,
            grid=(num_tiles,),
            in_specs=[
                pl.BlockSpec((TB, HW, C), lambda i: (i, 0, 0)),   # streamed
                pl.BlockSpec((C, Tp), lambda i: (0, 0)),          # resident
                pl.BlockSpec((1, Tp), lambda i: (0, 0)),
                pl.BlockSpec((1, Tp), lambda i: (0, 0)),
            ],
            # Constant block index -> output stays resident in VMEM across the
            # whole grid; written once by the last-tile epilogue.
            out_specs=pl.BlockSpec((B, Tp), lambda i: (0, 0)),
            scratch_shapes=[pltpu.VMEM((B, C), jnp.float32)],
        ),
        compiler_params=pltpu.CompilerParams(
            # BN's full-batch statistics make the batch axis a sequential
            # (accumulator) axis.
            dimension_semantics=("arbitrary",),
            # Generous but safe on every generation (v7x physical is 64 MiB;
            # v5e/v6e have 128 MiB physical).
            vmem_limit_bytes=48 * 1024 * 1024,
        ),
    )(x, w_t, g2, be2)

    return out[:, :T] if Tp != T else out


if __name__ == "__main__":
    # Small stand-in for resnet152's final feature map (real: C=2048, 7x7).
    # BatchNorm1d (training) needs B >= 2.  TARGET_SIZE deliberately NOT a
    # multiple of 128 so the lane-padding path is exercised.
    B, H, W, C = 16, 4, 4, 256
    TARGET_SIZE = 100

    key = jax.random.PRNGKey(0)
    k_x, k_w, k_b = jax.random.split(key, 3)

    # "images" after the frozen resnet trunk == pre-avgpool feature map,
    # channels-last (native TPU conv layout), bf16 (kernel is HBM-bound).
    features = jax.random.normal(
        k_x, (B, H, W, C), dtype=jnp.float32).astype(jnp.bfloat16)

    # EncoderCNN.init_weights(): linear.weight ~ N(0, 0.02), linear.bias = 0.
    # A non-zero bias is used here to demonstrate that it cancels under BN.
    w = 0.02 * jax.random.normal(k_w, (TARGET_SIZE, C), dtype=jnp.float32)
    b = 0.1 * jax.random.normal(k_b, (TARGET_SIZE,), dtype=jnp.float32)
    # nn.BatchNorm1d defaults: weight=1, bias=0.
    gamma = jnp.ones((TARGET_SIZE,), dtype=jnp.float32)
    beta = jnp.zeros((TARGET_SIZE,), dtype=jnp.float32)

    # batch_tile=8 -> grid=(2,) so the streaming / BN-accumulator path is
    # exercised even at these toy shapes.
    out = encoder_cnn_forward(features, w, b, gamma, beta, batch_tile=8)
    out = jax.block_until_ready(out)

    # Pure-JAX reference of the same math (bf16 feature map, bf16 matmul
    # operands with f32 accumulation -- the kernel's stated numerics -- and
    # with the linear bias INCLUDED, to check that it indeed cancels).
    x32 = features.astype(jnp.float32)
    feat_ref = jnp.mean(x32, axis=(1, 2))                          # [B, C]
    y_ref = jnp.dot(feat_ref.astype(jnp.bfloat16),
                    w.astype(jnp.bfloat16).T,
                    preferred_element_type=jnp.float32) + b        # [B, T]
    mu = jnp.mean(y_ref, axis=0, keepdims=True)
    var = jnp.mean((y_ref - mu) ** 2, axis=0, keepdims=True)
    ref = (y_ref - mu) / jnp.sqrt(var + BN_EPS) * gamma + beta

    assert out.shape == (B, TARGET_SIZE), out.shape
    max_err = jnp.max(jnp.abs(out - ref))
    assert max_err < 5e-3, max_err

    print("KERNEL_OK")
</pallas_src>

<mosaic_0001>
module attributes {stable_mosaic.version = 11 : i64} {
  func.func @encoder_cnn_kernel(%arg0: i32, %arg1: memref<8x16x256xbf16, #tpu.memory_space<vmem>>, %arg2: memref<256x128xbf16, #tpu.memory_space<vmem>>, %arg3: memref<1x128xf32, #tpu.memory_space<vmem>>, %arg4: memref<1x128xf32, #tpu.memory_space<vmem>>, %arg5: memref<16x128xf32, #tpu.memory_space<vmem>>, %arg6: memref<16x256xf32, #tpu.memory_space<vmem>>) attributes {dimension_semantics = [#tpu.dimension_semantics<arbitrary>], iteration_bounds = array<i64: 2>, scalar_prefetch = 0 : i64, scratch_operands = 1 : i64, tpu.core_type = #tpu.core_type<tc>, window_params = [{transform_indices = @transform_0, window_bounds = array<i64: 8, 16, 256>}, {pipeline_mode = #tpu.pipeline_mode<synchronous>, transform_indices = @transform_1, window_bounds = array<i64: 256, 128>}, {pipeline_mode = #tpu.pipeline_mode<synchronous>, transform_indices = @transform_2, window_bounds = array<i64: 1, 128>}, {pipeline_mode = #tpu.pipeline_mode<synchronous>, transform_indices = @transform_3, window_bounds = array<i64: 1, 128>}, {pipeline_mode = #tpu.pipeline_mode<synchronous>, transform_indices = @transform_4, window_bounds = array<i64: 16, 128>}]} {
    %c0 = arith.constant 0 : index
    %c0_0 = arith.constant 0 : index
    %c0_1 = arith.constant 0 : index
    %0 = vector.load %arg1[%c0, %c0_0, %c0_1] : memref<8x16x256xbf16, #tpu.memory_space<vmem>>, vector<8x16x256xbf16>
    %1 = arith.extf %0 : vector<8x16x256xbf16> to vector<8x16x256xf32>
    %cst = arith.constant dense<0.000000e+00> : vector<8x256xf32>
    %2 = vector.multi_reduction <add>, %1, %cst [1] : vector<8x16x256xf32> to vector<8x256xf32>
    %c8_i32 = arith.constant 8 : i32
    %3 = arith.muli %arg0, %c8_i32 : i32
    %4 = tpu.assume_multiple %3, 8 : i32
    %5 = arith.index_cast %4 : i32 to index
    %c0_2 = arith.constant 0 : index
    %6 = vector.load %arg6[%5, %c0_2] : memref<16x256xf32, #tpu.memory_space<vmem>>, vector<8x256xf32>
    tpu.vector_store %arg6[%5, %c0_2], %2 {strides = array<i32>} : memref<16x256xf32, #tpu.memory_space<vmem>>, vector<8x256xf32>,
    %c1_i32 = arith.constant 1 : i32
    %7 = arith.cmpi eq, %arg0, %c1_i32 : i32
    %8 = arith.extui %7 : i1 to i32
    %c0_i32 = arith.constant 0 : i32
    %9 = arith.cmpi ne, %8, %c0_i32 : i32
    scf.if %9 {
      %c0_3 = arith.constant 0 : index
      %c0_4 = arith.constant 0 : index
      %10 = vector.load %arg6[%c0_3, %c0_4] : memref<16x256xf32, #tpu.memory_space<vmem>>, vector<16x256xf32>
      %cst_5 = arith.constant 6.250000e-02 : f32
      %11 = vector.broadcast %cst_5 : f32 to vector<16x256xf32>
      %12 = arith.mulf %10, %11 : vector<16x256xf32>
      %13 = arith.truncf %12 : vector<16x256xf32> to vector<16x256xbf16>
      %c0_6 = arith.constant 0 : index
      %c0_7 = arith.constant 0 : index
      %14 = vector.load %arg2[%c0_6, %c0_7] : memref<256x128xbf16, #tpu.memory_space<vmem>>, vector<256x128xbf16>
      %cst_8 = arith.constant dense<0.000000e+00> : vector<16x128xf32>
      %15 = tpu.matmul %13, %14, %cst_8 {dimension_numbers = #tpu.dot_dimension_numbers<[1], [0], [0], [1], [0, 0, 1, 1], [], []>} : vector<16x256xbf16>, vector<256x128xbf16>, vector<16x128xf32> -> vector<16x128xf32>
      %cst_9 = arith.constant dense<0.000000e+00> : vector<128xf32>
      %16 = vector.multi_reduction <add>, %15, %cst_9 [0] : vector<16x128xf32> to vector<128xf32>
      %17 = vector.shape_cast %16 : vector<128xf32> to vector<1x128xf32>
      %cst_10 = arith.constant 1.600000e+01 : f32
      %18 = vector.broadcast %cst_10 : f32 to vector<1x128xf32>
      %19 = arith.divf %17, %18 : vector<1x128xf32>
      %20 = vector.broadcast %19 : vector<1x128xf32> to vector<16x128xf32>
      %21 = arith.subf %15, %20 : vector<16x128xf32>
      %22 = vector.broadcast %19 : vector<1x128xf32> to vector<16x128xf32>
      %23 = arith.subf %15, %22 : vector<16x128xf32>
      %24 = arith.mulf %21, %23 : vector<16x128xf32>
      %cst_11 = arith.constant dense<0.000000e+00> : vector<128xf32>
      %25 = vector.multi_reduction <add>, %24, %cst_11 [0] : vector<16x128xf32> to vector<128xf32>
      %26 = vector.shape_cast %25 : vector<128xf32> to vector<1x128xf32>
      %cst_12 = arith.constant 1.600000e+01 : f32
      %27 = vector.broadcast %cst_12 : f32 to vector<1x128xf32>
      %28 = arith.divf %26, %27 : vector<1x128xf32>
      %29 = vector.broadcast %19 : vector<1x128xf32> to vector<16x128xf32>
      %30 = arith.subf %15, %29 : vector<16x128xf32>
      %cst_13 = arith.constant 9.99999974E-6 : f32
      %31 = vector.broadcast %cst_13 : f32 to vector<1x128xf32>
      %32 = arith.addf %28, %31 : vector<1x128xf32>
      %33 = math.rsqrt %32 : vector<1x128xf32>
      %34 = vector.broadcast %33 : vector<1x128xf32> to vector<16x128xf32>
      %35 = arith.mulf %30, %34 : vector<16x128xf32>
      %c0_14 = arith.constant 0 : index
      %c0_15 = arith.constant 0 : index
      %36 = vector.load %arg3[%c0_14, %c0_15] : memref<1x128xf32, #tpu.memory_space<vmem>>, vector<1x128xf32>
      %37 = vector.broadcast %36 : vector<1x128xf32> to vector<16x128xf32>
      %38 = arith.mulf %35, %37 : vector<16x128xf32>
      %c0_16 = arith.constant 0 : index
      %c0_17 = arith.constant 0 : index
      %39 = vector.load %arg4[%c0_16, %c0_17] : memref<1x128xf32, #tpu.memory_space<vmem>>, vector<1x128xf32>
      %40 = vector.broadcast %39 : vector<1x128xf32> to vector<16x128xf32>
      %41 = arith.addf %38, %40 : vector<16x128xf32>
      %c0_18 = arith.constant 0 : index
      %c0_19 = arith.constant 0 : index
      %42 = vector.load %arg5[%c0_18, %c0_19] : memref<16x128xf32, #tpu.memory_space<vmem>>, vector<16x128xf32>
      tpu.vector_store %arg5[%c0_18, %c0_19], %41 {strides = array<i32>} : memref<16x128xf32, #tpu.memory_space<vmem>>, vector<16x128xf32>,
    } else {
    }
    return
  }
  func.func @transform_0(%arg0: i32) -> (i32, i32, i32) {
    %c0_i32 = arith.constant 0 : i32
    %c0_i32_0 = arith.constant 0 : i32
    %c0_i32_1 = arith.constant 0 : i32
    return %arg0, %c0_i32, %c0_i32_0 : i32, i32, i32
  }
  func.func @transform_1(%arg0: i32) -> (i32, i32) {
    %c0_i32 = arith.constant 0 : i32
    %c0_i32_0 = arith.constant 0 : i32
    %c0_i32_1 = arith.constant 0 : i32
    return %c0_i32, %c0_i32_0 : i32, i32
  }
  func.func @transform_2(%arg0: i32) -> (i32, i32) {
    %c0_i32 = arith.constant 0 : i32
    %c0_i32_0 = arith.constant 0 : i32
    %c0_i32_1 = arith.constant 0 : i32
    return %c0_i32, %c0_i32_0 : i32, i32
  }
  func.func @transform_3(%arg0: i32) -> (i32, i32) {
    %c0_i32 = arith.constant 0 : i32
    %c0_i32_0 = arith.constant 0 : i32
    %c0_i32_1 = arith.constant 0 : i32
    return %c0_i32, %c0_i32_0 : i32, i32
  }
  func.func @transform_4(%arg0: i32) -> (i32, i32) {
    %c0_i32 = arith.constant 0 : i32
    %c0_i32_0 = arith.constant 0 : i32
    %c0_i32_1 = arith.constant 0 : i32
    return %c0_i32, %c0_i32_0 : i32, i32
  }
}

</mosaic_0001>

<bundles_post_ra>
// kernel: tpu_custom_call.1
= control target key start
LH: loop header
LB: loop body
LE: loop exit
PB: predicated region body
PF: predicated region fallthrough
CT: control target
= control target key end

     0   :  { %9 = vsyncpa [#allocation4], 0  ;;  %s1275_s0 = inlined_call_operand.hbm [shape: bf16[16,16,256], index: 0, kind: input, shape index: {}]   ;;  %s1276_s1 = inlined_call_operand.hbm [shape: bf16[256,128], index: 1, kind: input, shape index: {}]   ;;  %s1277_s2 = inlined_call_operand.vmem [shape: f32[1,128], index: 2, kind: input, shape index: {}]   ;;  %s1278_s3 = inlined_call_operand.vmem [shape: f32[1,128], index: 3, kind: input, shape index: {}]   ;;  %s1279_s4 = inlined_call_operand.hbm [shape: f32[16,128], index: 4, kind: output, shape index: {}]  }
   0x1   :  { %11 = vsyncpa [#allocation4 + $0x1], 0 }
   0x2   :  { %12 = vsyncpa [#allocation7], 0 }
   0x3   :  { %13 = vsyncpa [#allocation5], 0  ;;  %s1027_s15 = smov 0   ;;  %s1029_s16 = smov 0  }
   0x4   :  { %s1031_s17 = smov 0   ;;  %s1033_s18 = smov 0  }
   0x5 LB: > { %s1046_s19 = sadd.s32 4294967295, %s991_s18   ;;  %p39_p0 = scmp.ne.s32.totalorder %s983_s16, %s979_s15  ;;  %s991_s18 = sphi %s1033_s18, %s1294_s18   ;;  %s987_s17 = sphi %s1031_s17, %s1293_s17   ;;  %s983_s16 = sphi %s1029_s16, %s1292_s16   ;;  %s979_s15 = sphi %s1027_s15, %s1291_s15  }
   0x6   : > { %p1280_p1 = scmp.eq.s32.totalorder %s1046_s19, 0  ;;  %p729_p2 = scmp.ge.s32.totalorder %s991_s18, 1 }
   0x7   : > { %p134_p3 = scmp.lt.s32.totalorder %s991_s18, 3  ;;  %s993_s22 = smov [#allocation6]  }
   0x8   : > { %p1054_p4 = por %p1280_p1, %p39_p0  ;;  %s146_s23 = sshll.u32 %s993_s22, 4  ;;  %s147_s23 = int_to_ptr.vmem [resolvable:$true] %s146_s23 }
   0x9   : > { %p1058_p5 = pnand %p729_p2, %p134_p3  ;;  %s1071_s25 = sadd.s32 1, %s991_s18  }
   0xa   : > { %s1283_s20 = scalar_select %p1054_p4, 1, 0 }
   0xb   : > { %s1284_s21 = scalar_select %p1058_p5, 1, 0 }
   0xc   : > { %p800_p6 = pneg %p1058_p5  ;;  %s26_s26 = sadd.s32 1, %s987_s17 }
   0xd   : > { %s23_s27 = ssub.s32 %s991_s18, %s1071_s25  ;;  %s882_s28 = scalar_lea.vmem %s147_s23, 2048 }
   0xe   : > { %p1066_p7 = pnand %p800_p6, %p1280_p1  ;;  %p883_p9 = scmp.ne.s32.totalorder %s147_s23, %s882_s28 }
   0xf   : > { %p890_p12 = scmp.lt.s32.totalorder %s147_s23, %s147_s23  ;;  %p891_p13 = scmp.lt.s32.totalorder %s882_s28, %s882_s28 }
  0x10   : > { %p873_p8 = pneg %p1066_p7 }
  0x11   : > { %p892_p0 = por %p891_p13, %p890_p12 }
  0x12   : > { %p885_p10 = pnand %p883_p9, %p873_p8 }
  0x14   : > { %p886_p11 = pneg %p885_p10 }
  0x16   : > { %p893_p2 = pnand %p892_p0, %p886_p11 }
  0x18   : > { %896 = shalt.err (!%p893_p2)
}
  0x19   : > { %s994_s29 = smov 64   ;;  %s995_s30 = smov 4  }
  0x1a   : > { %803 = dma.hbm_to_vmem [thread:$0]  (!%p1066_p7), %s1276_s1, 2048, %s147_s23, [#allocation7], %s994_s29, %s994_s29, %s995_s30  }
  0x1b   : > { %p24_p3 = scmp.eq.s32.totalorder %s23_s27, 0  ;;  %p33_p6 = scmp.ne.s32.totalorder %s987_s17, %s983_s16 }
  0x1c   : > { %p34_p8 = scmp.eq.s32.totalorder %s991_s18, 0  ;;  %p809_p9 = scmp.lt.s32.totalorder %s991_s18, 2 }
  0x1d   : > { %s1088_s7 = scalar_select %p24_p3, %s987_s17, %s26_s26  }
  0x1e   : > { %p35_p10 = por %p34_p8, %p33_p6  ;;  %s166_s8 = sand.u32 1, %s987_s17  }
  0x1f   : > { %s732_s9 = sshll.u32 %s166_s8, 7  ;;  %s766_s10 = sshll.u32 %s991_s18, 11 }
  0x20   : > { %s1095_s13 = scalar_lea.hbm %s1275_s0, %s766_s10  ;;  %s170_s14 = scalar_lea.vmem [#allocation3], %s732_s9 }
  0x21   : > { %s178_s15 = sshll.u32 %s170_s14, 4  ;;  %p1099_p7 = pnand %p809_p9, %p35_p10  ;;  %s1097_s15 = int_to_ptr.vmem [resolvable:$true] %s178_s15 }
  0x22   : > { %s1103_s23 = scalar_lea.sflag [#allocation4], %s166_s8  ;;  %s897_s18 = scalar_lea.hbm %s1095_s13, 2048 }
  0x23   : > { %p898_p11 = scmp.ne.s32.totalorder %s1095_s13, %s897_s18  ;;  %p899_p12 = pneg %p1099_p7 }
  0x24   : > { %s902_s27 = scalar_lea.hbm %s1275_s0, 4096  ;;  %p903_p2 = scmp.lt.s32.totalorder %s1095_s13, %s1275_s0 }
  0x25   : > { %p900_p13 = pnand %p899_p12, %p898_p11  ;;  %p904_p3 = scmp.lt.s32.totalorder %s902_s27, %s897_s18 }
  0x27   : > { %p901_p0 = pneg %p900_p13  ;;  %p905_p6 = por %p904_p3, %p903_p2 }
  0x29   : > { %p906_p8 = pnand %p905_p6, %p901_p0 }
  0x2b   : > { %909 = shalt.err (!%p906_p8)
}
  0x2c   : > { %s910_s30 = scalar_lea.vmem %s1097_s15, 2048  ;;  %s996_s5 = smov [#allocation3]  }
  0x2d   : > { %p911_p9 = scmp.ne.s32.totalorder %s1097_s15, %s910_s30  ;;  %s915_s6 = sshll.u32 %s996_s5, 4  ;;  %s916_s6 = int_to_ptr.vmem [resolvable:$false] %s915_s6 }
  0x2e   : > { %s917_s8 = scalar_lea.vmem %s916_s6, 4096  ;;  %p918_p13 = scmp.lt.s32.totalorder %s1097_s15, %s916_s6 }
  0x2f   : > { %p913_p10 = pnand %p911_p9, %p899_p12  ;;  %p919_p1 = scmp.lt.s32.totalorder %s917_s8, %s910_s30 }
  0x31   : > { %p914_p11 = pneg %p913_p10  ;;  %p920_p4 = por %p919_p1, %p918_p13 }
  0x33   : > { %p921_p5 = pnand %p920_p4, %p914_p11 }
  0x35   : > { %924 = shalt.err (!%p921_p5)
}
  0x36   : > { %s997_s9 = smov 128   ;;  %s998_s10 = smov 8  }
  0x37   : > { %807 = dma.hbm_to_vmem [thread:$0]  (!%p1099_p7), %s1095_s13, 2048, %s1097_s15, %s1103_s23, %s997_s9, %s997_s9, %s998_s10  }
  0x38   : > { %p1287_p12 = scmp.ne.s32.totalorder %s1284_s21, 0 }
  0x39   : > { %s192_s11 = sand.u32 (!%p1287_p12), 1, %s983_s16   ;;  %p1288_p1 = scmp.ne.s32.totalorder (!%p1287_p12), %s1283_s20, 0 }
  0x3a   : > { %190 = sbr.rel (%p1287_p12) target bundleno = 423 (0x1a7), region = 36  ;;  %s737_s12 = sshll.u32 (!%p1287_p12), %s192_s11, 7 }
  0x3b   : > { %s193_s14 = scalar_lea.sflag (!%p1287_p12), [#allocation4], %s192_s11  ;;  %s1127_s18 = scalar_lea.vmem (!%p1287_p12), [#allocation3], %s737_s12 }
  0x3f   : > { %966 = dma.done.wait (%p1288_p1), %s193_s14, 2048  }
  0x40   : > { %968 = vsyncadd (%p1288_p1), %s193_s14, 4294965248  ;;  %p1289_p4 = scmp.eq.s32.totalorder %s1046_s19, 0 }
  0x42   : > { %970 = dma.done.wait (%p1289_p4), [#allocation7], 2048   ;;  %p1290_p5 = pmov %p1289_p4 }
  0x43   : > { %v1138_v0 = vld [vmem:[%s1127_s18] sm:$0xff]  ;;  %v1141_v1 = vld [vmem:[%s1127_s18 + $0x8] sm:$0xff]  ;;  %v1144_v2 = vld [vmem:[%s1127_s18 + $0x10] sm:$0xff]  ;;  %vm399_vm0 = vcmask 1041409   ;;  %vm401_vm1 = vcmask 1042434   ;;  %vm403_vm2 = vcmask 1043459  }
  0x44   : > { %972 = vsyncadd (%p1290_p5), [#allocation7], 4294965248  ;;  %v1147_v3 = vld [vmem:[%s1127_s18 + $0x18] sm:$0xff]  ;;  %v1150_v4 = vld [vmem:[%s1127_s18 + $0x20] sm:$0xff]  ;;  %v238_v6 = vunpack.c.l.bf16 %v1138_v0  ;;  %v240_v7 = vunpack.c.l.bf16 %v1141_v1  ;;  %v242_v8 = vunpack.c.l.bf16 %v1144_v2  ;;  %v239_v9 = vunpack.c.h.bf16 %v1138_v0  ;;  %s739_s20 = sshll.u32 %s1046_s19, 3  ;;  %p742_p7 = scmp.ne.s32.totalorder %s1046_s19, 1 }
  0x45   : > { %v1153_v5 = vld [vmem:[%s1127_s18 + $0x28] sm:$0xff]  ;;  %v1160_v10 = vld [vmem:[%s1127_s18 + $0x30] sm:$0xff]  ;;  %v1163_v11 = vld [vmem:[%s1127_s18 + $0x38] sm:$0xff]  ;;  %v244_v13 = vunpack.c.l.bf16 %v1147_v3  ;;  %v246_v14 = vunpack.c.l.bf16 %v1150_v4  ;;  %v241_v16 = vunpack.c.h.bf16 %v1141_v1  ;;  %vm405_vm3 = vcmask 1044484   ;;  %s1204_s21 = sshra.s32 %s739_s20, 3 }
  0x46   : > { %v1166_v12 = vld [vmem:[%s1127_s18 + $0x40] sm:$0xff]  ;;  %v248_v15 = vunpack.c.l.bf16 %v1153_v5  ;;  %v1173_v17 = vld [vmem:[%s1127_s18 + $0x48] sm:$0xff]  ;;  %v1176_v18 = vld [vmem:[%s1127_s18 + $0x50] sm:$0xff]  ;;  %v250_v20 = vunpack.c.l.bf16 %v1160_v10  ;;  %v252_v21 = vunpack.c.l.bf16 %v1163_v11  ;;  %v270_v23 = vadd.f32 %v240_v7, %v238_v6  ;;  %s767_s13 = sshll.u32 %s1204_s21, 4 }
  0x47   : > { %v1179_v19 = vld [vmem:[%s1127_s18 + $0x58] sm:$0xff]  ;;  %v254_v22 = vunpack.c.l.bf16 %v1166_v12  ;;  %v1185_v24 = vld [vmem:[%s1127_s18 + $0x60] sm:$0xff]  ;;  %v1188_v25 = vld [vmem:[%s1127_s18 + $0x68] sm:$0xff]  ;;  %v256_v27 = vunpack.c.l.bf16 %v1173_v17  ;;  %v258_v28 = vunpack.c.l.bf16 %v1176_v18  ;;  %v284_v30 = vadd.f32 %v244_v13, %v242_v8  ;;  %s1232_s15 = scalar_lea.vmem [#allocation2], %s767_s13 }
  0x48   : > { %v1191_v26 = vld [vmem:[%s1127_s18 + $0x70] sm:$0xff]  ;;  %v260_v29 = vunpack.c.l.bf16 %v1179_v19  ;;  %v1197_v31 = vld [vmem:[%s1127_s18 + $0x78] sm:$0xff]  ;;  %v262_v32 = vunpack.c.l.bf16 %v1185_v24  ;;  %v264_v33 = vunpack.c.l.bf16 %v1188_v25  ;;  %v271_v35 = vrot.slane %v270_v23, 4 }
  0x49   : > { %v266_v34 = vunpack.c.l.bf16 %v1191_v26  ;;  %v268_v36 = vunpack.c.l.bf16 %v1197_v31  ;;  %v285_v37 = vrot.slane %v284_v30, 4  ;;  %v298_v38 = vadd.f32 %v248_v15, %v246_v14 }
  0x4a   : > { %v312_v39 = vadd.f32 %v252_v21, %v250_v20  ;;  %v272_v40 = vadd.f32 %v271_v35, %v270_v23  ;;  %v326_v41 = vadd.f32 %v256_v27, %v254_v22  ;;  %v340_v42 = vadd.f32 %v260_v29, %v258_v28 }
  0x4b   : > { %v354_v43 = vadd.f32 %v264_v33, %v262_v32  ;;  %v286_v44 = vadd.f32 %v285_v37, %v284_v30  ;;  %v299_v45 = vrot.slane %v298_v38, 4  ;;  %v368_v47 = vadd.f32 %v268_v36, %v266_v34 }
  0x4c   : > { %v313_v46 = vrot.slane %v312_v39, 4  ;;  %v273_v48 = vrot.slane %v272_v40, 2  ;;  %v327_v49 = vrot.slane %v326_v41, 4  ;;  %v341_v50 = vrot.slane %v340_v42, 4 }
  0x4d   : > { %v355_v51 = vrot.slane %v354_v43, 4  ;;  %v287_v52 = vrot.slane %v286_v44, 2  ;;  %v300_v53 = vadd.f32 %v299_v45, %v298_v38  ;;  %v369_v55 = vrot.slane %v368_v47, 4 }
  0x4e   : > { %v314_v54 = vadd.f32 %v313_v46, %v312_v39  ;;  %v274_v56 = vadd.f32 %v273_v48, %v272_v40  ;;  %v328_v57 = vadd.f32 %v327_v49, %v326_v41  ;;  %v342_v58 = vadd.f32 %v341_v50, %v340_v42 }
  0x4f   : > { %v356_v59 = vadd.f32 %v355_v51, %v354_v43  ;;  %v288_v60 = vadd.f32 %v287_v52, %v286_v44  ;;  %v301_v61 = vrot.slane %v300_v53, 2  ;;  %v370_v63 = vadd.f32 %v369_v55, %v368_v47 }
  0x50   : > { %v315_v62 = vrot.slane %v314_v54, 2  ;;  %vm407_vm4 = vcmask 1045509   ;;  %v275_v6 = vrot.slane %v274_v56, 1  ;;  %v329_v7 = vrot.slane %v328_v57, 2 }
  0x51   : > { %v343_v8 = vrot.slane %v342_v58, 2  ;;  %v357_v13 = vrot.slane %v356_v59, 2  ;;  %vm409_vm5 = vcmask 1046534   ;;  %v289_v14 = vrot.slane %v288_v60, 1 }
  0x52   : > { %v302_v15 = vadd.f32 %v301_v61, %v300_v53  ;;  %v316_v20 = vadd.f32 %v315_v62, %v314_v54  ;;  %v371_v21 = vrot.slane %v370_v63, 2  ;;  %vm411_vm6 = vcmask 1047559  }
  0x53   : > { %v276_v22 = vadd.f32 %v275_v6, %v274_v56  ;;  %v330_v23 = vadd.f32 %v329_v7, %v328_v57  ;;  %v344_v27 = vadd.f32 %v343_v8, %v342_v58  ;;  %v358_v28 = vadd.f32 %v357_v13, %v356_v59 }
  0x54   : > { %v290_v29 = vadd.f32 %v289_v14, %v288_v60  ;;  %v303_v30 = vrot.slane %v302_v15, 1  ;;  %v317_v32 = vrot.slane %v316_v20, 1  ;;  %v372_v33 = vadd.f32 %v371_v21, %v370_v63 }
  0x55   : > { %v331_v34 = vrot.slane %v330_v23, 1  ;;  %v345_v35 = vrot.slane %v344_v27, 1  ;;  %v359_v36 = vrot.slane %v358_v28, 1  ;;  %v243_v37 = vunpack.c.h.bf16 %v1144_v2 }
  0x56   : > { %v304_v38 = vadd.f32 %v303_v30, %v302_v15  ;;  %v318_v39 = vadd.f32 %v317_v32, %v316_v20  ;;  %v373_v40 = vrot.slane %v372_v33, 1  ;;  %v400_v41 = vsel %vm399_vm0, %v290_v29, %v276_v22 }
  0x57   : > { %v332_v42 = vadd.f32 %v331_v34, %v330_v23  ;;  %v346_v43 = vadd.f32 %v345_v35, %v344_v27  ;;  %v360_v44 = vadd.f32 %v359_v36, %v358_v28  ;;  %v245_v45 = vunpack.c.h.bf16 %v1147_v3 }
  0x58   : > { %v374_v46 = vadd.f32 %v373_v40, %v372_v33  ;;  %v402_v47 = vsel %vm401_vm1, %v304_v38, %v400_v41  ;;  %v247_v48 = vunpack.c.h.bf16 %v1150_v4  ;;  %v249_v49 = vunpack.c.h.bf16 %v1153_v5 }
  0x59   : > { %v404_v2 = vsel %vm403_vm2, %v318_v39, %v402_v47  ;;  %v251_v50 = vunpack.c.h.bf16 %v1160_v10  ;;  %v253_v51 = vunpack.c.h.bf16 %v1163_v11  ;;  %v255_v52 = vunpack.c.h.bf16 %v1166_v12 }
  0x5a   : > { %v406_v53 = vsel %vm405_vm3, %v332_v42, %v404_v2  ;;  %v257_v3 = vunpack.c.h.bf16 %v1173_v17  ;;  %v259_v54 = vunpack.c.h.bf16 %v1176_v18  ;;  %v261_v55 = vunpack.c.h.bf16 %v1179_v19 }
  0x5b   : > { %v408_v4 = vsel %vm407_vm4, %v346_v43, %v406_v53  ;;  %v263_v5 = vunpack.c.h.bf16 %v1185_v24  ;;  %v265_v56 = vunpack.c.h.bf16 %v1188_v25  ;;  %v267_v10 = vunpack.c.h.bf16 %v1191_v26 }
  0x5c   : > { %v410_v11 = vsel %vm409_vm5, %v360_v44, %v408_v4  ;;  %v269_v12 = vunpack.c.h.bf16 %v1197_v31  ;;  %v277_v17 = vadd.f32 %v241_v16, %v239_v9  ;;  %v291_v18 = vadd.f32 %v245_v45, %v243_v37 }
  0x5d   : > { %v412_v19 = vsel %vm411_vm6, %v374_v46, %v410_v11  ;;  %v305_v57 = vadd.f32 %v249_v49, %v247_v48  ;;  %v319_v58 = vadd.f32 %v253_v51, %v251_v50  ;;  %v333_v59 = vadd.f32 %v257_v3, %v255_v52 }
  0x5e   : > { %427 = vst [vmem:[%s1232_s15] sm:$0xff] %v412_v19  ;;  %v278_v24 = vrot.slane %v277_v17, 4  ;;  %v292_v25 = vrot.slane %v291_v18, 4  ;;  %v347_v26 = vadd.f32 %v261_v55, %v259_v54  ;;  %v361_v60 = vadd.f32 %v265_v56, %v263_v5 }
  0x5f   : > { %v306_v31 = vrot.slane %v305_v57, 4  ;;  %v320_v61 = vrot.slane %v319_v58, 4  ;;  %v334_v0 = vrot.slane %v333_v59, 4  ;;  %v375_v62 = vadd.f32 %v269_v12, %v267_v10 }
  0x60   : > { %v279_v1 = vadd.f32 %v278_v24, %v277_v17  ;;  %v293_v9 = vadd.f32 %v292_v25, %v291_v18  ;;  %v348_v16 = vrot.slane %v347_v26, 4  ;;  %v362_v63 = vrot.slane %v361_v60, 4 }
  0x61   : > { %v307_v6 = vadd.f32 %v306_v31, %v305_v57  ;;  %v321_v7 = vadd.f32 %v320_v61, %v319_v58  ;;  %v335_v8 = vadd.f32 %v334_v0, %v333_v59  ;;  %v376_v13 = vrot.slane %v375_v62, 4 }
  0x62   : > { %v280_v14 = vrot.slane %v279_v1, 2  ;;  %v294_v15 = vrot.slane %v293_v9, 2  ;;  %v349_v20 = vadd.f32 %v348_v16, %v347_v26  ;;  %v363_v21 = vadd.f32 %v362_v63, %v361_v60 }
  0x63   : > { %v308_v22 = vrot.slane %v307_v6, 2  ;;  %v322_v23 = vrot.slane %v321_v7, 2  ;;  %v336_v27 = vrot.slane %v335_v8, 2  ;;  %v377_v28 = vadd.f32 %v376_v13, %v375_v62 }
  0x64   : > { %v281_v29 = vadd.f32 %v280_v14, %v279_v1  ;;  %v295_v30 = vadd.f32 %v294_v15, %v293_v9  ;;  %v350_v32 = vrot.slane %v349_v20, 2  ;;  %v364_v33 = vrot.slane %v363_v21, 2 }
  0x65   : > { %v309_v34 = vadd.f32 %v308_v22, %v307_v6  ;;  %v323_v35 = vadd.f32 %v322_v23, %v321_v7  ;;  %v337_v36 = vadd.f32 %v336_v27, %v335_v8  ;;  %v378_v37 = vrot.slane %v377_v28, 2 }
  0x66   : > { %v282_v38 = vrot.slane %v281_v29, 1  ;;  %v296_v39 = vrot.slane %v295_v30, 1  ;;  %v351_v40 = vadd.f32 %v350_v32, %v349_v20  ;;  %v365_v41 = vadd.f32 %v364_v33, %v363_v21 }
  0x67   : > { %v310_v42 = vrot.slane %v309_v34, 1  ;;  %v324_v43 = vrot.slane %v323_v35, 1  ;;  %v338_v44 = vrot.slane %v337_v36, 1  ;;  %v379_v45 = vadd.f32 %v378_v37, %v377_v28 }
  0x68   : > { %v283_v46 = vadd.f32 %v282_v38, %v281_v29  ;;  %v297_v47 = vadd.f32 %v296_v39, %v295_v30  ;;  %v352_v48 = vrot.slane %v351_v40, 1  ;;  %v366_v49 = vrot.slane %v365_v41, 1 }
  0x69   : > { %v311_v2 = vadd.f32 %v310_v42, %v309_v34  ;;  %v325_v50 = vadd.f32 %v324_v43, %v323_v35  ;;  %v339_v51 = vadd.f32 %v338_v44, %v337_v36  ;;  %v380_v52 = vrot.slane %v379_v45, 1 }
  0x6a   : > { %v353_v53 = vadd.f32 %v352_v48, %v351_v40  ;;  %v413_v3 = vsel %vm399_vm0, %v297_v47, %v283_v46  ;;  %v367_v54 = vadd.f32 %v366_v49, %v365_v41 }
  0x6b   : > { %v414_v55 = vsel %vm401_vm1, %v311_v2, %v413_v3  ;;  %v381_v4 = vadd.f32 %v380_v52, %v379_v45 }
  0x6c   : > { %v415_v5 = vsel %vm403_vm2, %v325_v50, %v414_v55 }
  0x6d   : > { %v416_v56 = vsel %vm405_vm3, %v339_v51, %v415_v5  ;;  %432 = sbr.rel (%p742_p7) target bundleno = 407 (0x197), region = 48 }
  0x6e   : > { %v417_v10 = vsel %vm407_vm4, %v353_v53, %v416_v56 }
  0x6f   : > { %v418_v11 = vsel %vm409_vm5, %v367_v54, %v417_v10 }
  0x70   : > { %v419_v12 = vsel %vm411_vm6, %v381_v4, %v418_v11 }
  0x71   : > { %428 = vst [vmem:[%s1232_s15 + $0x8] sm:$0xff] %v419_v12 }
  0x72   : > { %v853_v17 = vld [vmem:[#allocation6 + $0x78] sm:$0xff]   ;;  %v855_v19 = vld [vmem:[#allocation6 + $0x70] sm:$0xff]   ;;  %v857_v58 = vld [vmem:[#allocation6 + $0x68] sm:$0xff]  }
  0x73   : > { %v854_v18 = vld [vmem:[#allocation6 + $0x38] sm:$0xff]   ;;  %768 = vmatprep.subr.bf16.mxu0 %v853_v17  ;;  %v856_v57 = vld [vmem:[#allocation6 + $0x30] sm:$0xff]   ;;  %v858_v59 = vld [vmem:[#allocation6 + $0x28] sm:$0xff]  }
  0x74   : > { %769 = vmatpush3.bf16.msra.mxu0 %v854_v18  ;;  %v859_v24 = vld [vmem:[#allocation6 + $0x60] sm:$0xff]   ;;  %v861_v26 = vld [vmem:[#allocation6 + $0x58] sm:$0xff]   ;;  %v863_v31 = vld [vmem:[#allocation6 + $0x50] sm:$0xff]  }
  0x75   : > { %770 = vmatprep.subr.bf16.mxu0 %v855_v19  ;;  %v860_v25 = vld [vmem:[#allocation6 + $0x20] sm:$0xff]   ;;  %v862_v60 = vld [vmem:[#allocation6 + $0x18] sm:$0xff]   ;;  %v864_v9 = vld [vmem:[#allocation6 + $0x10] sm:$0xff]  }
  0x76   : > { %v865_v63 = vld [vmem:[#allocation6 + $0x48] sm:$0xff]   ;;  %v867_v13 = vld [vmem:[#allocation6 + $0x40] sm:$0xff]  }
  0x77   : > { %v866_v6 = vld [vmem:[#allocation6 + $0x8] sm:$0xff]   ;;  %v868_v20 = vld [vmem:[#allocation6] sm:$0xff]  }
  0x78   : > { %771 = vmatpush3.bf16.msra.mxu0 %v856_v57  ;;  %v434_v61 = vld [vmem:[#allocation2 + $0x8] sm:$0xff]  ;;  %v436_v0 = vld [vmem:[#allocation2 + $0x18] sm:$0xff]  ;;  %v433_v7 = vld [vmem:[#allocation2] sm:$0xff] }
  0x79   : > { %772 = vmatprep.subr.bf16.mxu0 %v857_v58  ;;  %v438_v62 = vmul.f32 0.0625, %v434_v61  ;;  %v440_v1 = vmul.f32 0.0625, %v436_v0  ;;  %v435_v8 = vld [vmem:[#allocation2 + $0x10] sm:$0xff]  ;;  %v437_v14 = vmul.f32 0.0625, %v433_v7  ;;  %v759_v53 = vld [vmem:[%s1277_s2] ss:$0 sm:$0xff] }
  0x7a   : > { %v439_v15 = vmul.f32 0.0625, %v435_v8  ;;  %v760_v55 = vld [vmem:[%s1278_s3] ss:$0 sm:$0xff] }
  0x7b   : > { %v442_v16 = vpack.c.bf16 %v440_v1, %v438_v62 }
  0x7c   : > { %773 = vmatpush3.bf16.msra.mxu0 %v858_v59  ;;  %v441_v21 = vpack.c.bf16 %v439_v15, %v437_v14 }
  0x7d   : > { %774 = vmatprep.subr.bf16.mxu0 %v859_v24  ;;  %603 = vmatprep.mubr.bf16.mxu0 %v442_v16 }
  0x80   : > { %775 = vmatpush3.bf16.msra.mxu0 %v860_v25 }
  0x81   : > { %776 = vmatprep.subr.bf16.mxu0 %v861_v26 }
  0x84   : > { %777 = vmatpush3.bf16.msra.mxu0 %v862_v60 }
  0x85   : > { %778 = vmatprep.subr.bf16.mxu0 %v863_v31 }
  0x88   : > { %779 = vmatpush3.bf16.msra.mxu0 %v864_v9 }
  0x89   : > { %780 = vmatprep.subr.bf16.mxu0 %v865_v63 }
  0x8c   : > { %781 = vmatpush3.bf16.msra.mxu0 %v866_v6 }
  0x8d   : > { %782 = vmatprep.subr.bf16.mxu0 %v867_v13 }
  0x90   : > { %783 = vmatpush3.bf16.msra.mxu0 %v868_v20 }
  0x93   : > { %604 = vmatmul.mubr.bf16.vlgmr.msra.gmra.mxu0 %v441_v21 }
 0x153   : > { %v784_v22 = vpop.f32.mrf.mxu0 }
 0x155   : > { %v785_v23 = vpop.f32.mrf.mxu0 }
 0x156   : > { %v786_v29 = vadd.f32 %v785_v23, %v784_v22 }
 0x157   : > { %v787_v27 = vpop.f32.mrf.mxu0 }
 0x159   : > { %v788_v28 = vpop.f32.mrf.mxu0 }
 0x15a   : > { %v789_v30 = vadd.f32 %v788_v28, %v787_v27 }
 0x15c   : > { %v612_v32 = vadd.f32 %v789_v30, %v786_v29 }
 0x15e   : > { %v613_v33 = vrot.slane %v612_v32, 4 }
 0x160   : > { %v614_v34 = vadd.f32 %v613_v33, %v612_v32 }
 0x162   : > { %v615_v35 = vrot.slane %v614_v34, 2 }
 0x164   : > { %v616_v36 = vadd.f32 %v615_v35, %v614_v34 }
 0x166   : > { %v617_v37 = vrot.slane %v616_v36, 1 }
 0x168   : > { %v618_v38 = vadd.f32 %v617_v37, %v616_v36 }
 0x16a   : > { %v620_v39 = vmul.f32 0.0625, %v618_v38 }
 0x16c   : > { %v621_v40 = vsub.f32 %v786_v29, %v620_v39  ;;  %v622_v41 = vsub.f32 %v789_v30, %v620_v39 }
 0x16e   : > { %v623_v42 = vmul.f32 %v621_v40, %v621_v40  ;;  %v624_v43 = vmul.f32 %v622_v41, %v622_v41 }
 0x170   : > { %v625_v44 = vadd.f32 %v624_v43, %v623_v42 }
 0x172   : > { %v626_v45 = vrot.slane %v625_v44, 4 }
 0x174   : > { %v627_v46 = vadd.f32 %v626_v45, %v625_v44 }
 0x176   : > { %v628_v47 = vrot.slane %v627_v46, 2 }
 0x178   : > { %v629_v48 = vadd.f32 %v628_v47, %v627_v46 }
 0x17a   : > { %v630_v49 = vrot.slane %v629_v48, 1 }
 0x17c   : > { %v631_v2 = vadd.f32 %v630_v49, %v629_v48 }
 0x17e   : > { %v632_v50 = vmul.f32 0.0625, %v631_v2 }
 0x180   : > { %v633_v51 = vadd.f32 1e-05, %v632_v50 }
 0x182   : > { %869 = vrsqrt.f32 %v633_v51 }
 0x18f   : > { %v870_v52 = vpop.eup %869 }
 0x190   : > { %v635_v3 = vmul.f32 %v870_v52, %v621_v40  ;;  %v636_v54 = vmul.f32 %v870_v52, %v622_v41 }
 0x192   : > { %v644_v4 = vmul.f32 %v759_v53, %v635_v3  ;;  %v645_v5 = vmul.f32 %v759_v53, %v636_v54 }
 0x194   : > { %v653_v56 = vadd.f32 %v760_v55, %v644_v4  ;;  %v654_v10 = vadd.f32 %v760_v55, %v645_v5 }
 0x196   : > { %655 = vst [vmem:[#allocation8] sm:$0xff] %v653_v56  ;;  %656 = vst [vmem:[#allocation8 + $0x8] sm:$0xff] %v654_v10 }
 0x197 PF: > { %p811_p0 = scmp.eq.s32.totalorder %s1046_s19, 1  ;;  %s999_s27 = smov [#allocation8]  }
 0x198   : > { %s663_s28 = sshll.u32 %s999_s27, 4  ;;  %s664_s28 = int_to_ptr.vmem [resolvable:$true] %s663_s28 }
 0x199   : > { %s925_s29 = scalar_lea.vmem %s664_s28, 256  ;;  %p932_p8 = scmp.lt.s32.totalorder %s664_s28, %s664_s28 }
 0x19a   : > { %p926_p2 = scmp.ne.s32.totalorder %s664_s28, %s925_s29  ;;  %p933_p9 = scmp.lt.s32.totalorder %s925_s29, %s925_s29 }
 0x19c   : > { %p927_p3 = pnand %p926_p2, %p811_p0  ;;  %p934_p10 = por %p933_p9, %p932_p8 }
 0x19e   : > { %p928_p6 = pneg %p927_p3 }
 0x1a0   : > { %p935_p11 = pnand %p934_p10, %p928_p6 }
 0x1a2   : > { %938 = shalt.err (!%p935_p11)
}
 0x1a3   : > { %s1000_s30 = smov 128   ;;  %s1001_s5 = smov 8  }
 0x1a4   : > { %797 = dma.vmem_to_hbm [thread:$0]  (%p811_p0), %s664_s28, 256, %s1279_s4, [#allocation5], %s1000_s30, %s1000_s30, %s1001_s5  }
 0x1a5   : > { %974 = dma.done.wait (%p811_p0), [#allocation5], 256  }
 0x1a6   : > { %976 = vsyncadd (%p811_p0), [#allocation5], 4294967040 }
 0x1a7 PF: > { %p16_p13 = scmp.ge.s32.totalorder %s1071_s25, 4   ;;  %s1291_s15 = smov %s983_s16 }
 0x1a8   : > { %s1292_s16 = smov %s987_s17  ;;  %s1293_s17 = smov %s1088_s7 }
 0x1a9   : > { %s1294_s18 = smov %s1071_s25  ;;  %18 = sbr.rel (!%p16_p13) target bundleno = 5 (0x5), region = 82 }
 0x1ae   :  { %679 = vsyncpa [#allocation4], 1 }
 0x1af   :  { %681 = vsyncpa [#allocation4 + $0x1], 1 }
 0x1b0   :  { %682 = vsyncpa [#allocation7], 1 }
 0x1b1   :  { %683 = vsyncpa [#allocation5], 1 }
 0x1b2   :  { %685 = vsyncpa [#allocation5 + $0x1], 1 }

</bundles_post_ra>
